<compile_context>
chip_gen: v7x
topology: tpu7x:2x2x1
jax: 0.10.0
libtpu: 0.0.40
codegen_flags: <defaults>
</compile_context>

<pallas_src>
import functools

import jax
import jax.numpy as jnp
from jax.experimental import pallas as pl
from jax.experimental.pallas import tpu as pltpu


def _round_up(x, m):
    return (x + m - 1) // m * m


def _feature_multiple():
    """256-alignment fills v6e/v7x's 256-wide MXU tiles; 128 elsewhere (v5e)."""
    try:
        kind = jax.devices()[0].device_kind.lower()
    except Exception:
        kind = ""
    return 256 if ("v6" in kind or "v7" in kind) else 128


def _vmem_capacity_bytes():
    try:
        return int(pltpu.get_tpu_info().vmem_capacity_bytes)
    except Exception:
        return 64 * 1024 * 1024  # conservative fallback: v7x per-TC VMEM


def _ffn_kernel(x_ref, w1_ref, b1_ref, w2_ref, b2_ref, o_ref):
    # x_ref: (tm, dim)        w1_ref: (dim, hid_p)    b1_ref: (1, hid_p) f32
    # w2_ref: (hid_p, dim_p)  b2_ref: (1, dim_p) f32  o_ref:  (tm, dim_p)
    x = x_ref[...]

    # Linear 1 on the MXU: native-dtype operands, f32 accumulation.
    h = jnp.dot(x, w1_ref[...], preferred_element_type=jnp.float32)
    h = h + b1_ref[...]

    # SiLU in f32: sigmoid on the EUP, multiply on the VPU.
    # TODO(synk): bf16 SiLU on v6e/v7x if a bundle dump shows the EUP slot binding.
    h = h * jax.nn.sigmoid(h)

    # Dropout(p=0.0) -> identity (inference semantics).
    # TODO(synk): training-time dropout (p>0) would need pltpu.prng_* masks.

    # Linear 2: cast activation back to the weight dtype for the MXU fast path.
    y = jnp.dot(h.astype(w2_ref.dtype), w2_ref[...],
                preferred_element_type=jnp.float32)
    y = y + b2_ref[...]

    o_ref[...] = y.astype(o_ref.dtype)
    # TODO(synk): for very large hidden_dim (>=4k) add a hidden-chunk loop with
    # an (tm, dim_p) f32 accumulator to bound the (tm, hid_p) intermediates.


@functools.partial(jax.jit, static_argnames=("tm", "compute_dtype"))
def feed_forward(x, w1, b1, w2, b2, *, tm=None, compute_dtype=None):
    """x: (B, N, dim) -> (B, N, dim).  w1: (dim, hidden), w2: (hidden, dim)."""
    B, N, dim = x.shape
    hidden = w1.shape[1]
    M = B * N

    cdt = jnp.dtype(compute_dtype) if compute_dtype is not None else jnp.dtype(x.dtype)
    out_dtype = x.dtype
    csz = cdt.itemsize
    osz = jnp.dtype(out_dtype).itemsize

    # Lane-dense feature padding only where it matters (hidden axis + output
    # feature axis); x and W1's K axis stay unpadded.
    fmult = _feature_multiple()
    dim_p = _round_up(dim, fmult) if dim >= 256 else _round_up(dim, 128)
    hid_p = _round_up(hidden, fmult) if hidden >= 256 else _round_up(hidden, 128)

    capacity = _vmem_capacity_bytes()

    def vmem_needed(rows):
        return (2 * rows * dim * csz            # x tile, double-buffered
                + 2 * rows * dim_p * osz        # out tile, double-buffered
                + dim * hid_p * csz             # W1, single-buffered
                + hid_p * dim_p * csz           # W2, single-buffered
                + (hid_p + dim_p) * 4           # f32 biases
                + rows * hid_p * (4 + csz)      # f32 h + its cast copy
                + rows * dim_p * 4)             # f32 y accumulator

    if tm is None:
        # >= 2 grid steps when possible (feeds both v7x TensorCores), cap 512.
        tm = max(8, min(512, _round_up(max(M // 2, 1), 8)))
    else:
        tm = max(8, _round_up(int(tm), 8))
    # Shrink the row tile if the working set would bust the VMEM budget.
    while tm > 8 and vmem_needed(tm) > int(0.6 * capacity):
        tm = max(8, _round_up(tm // 2, 8))

    grid = (pl.cdiv(M, tm),)  # ragged last block handled by Pallas masking

    # Host-side prep: no M padding, no x lane padding (only a cast if requested).
    x2d = x.reshape(M, dim).astype(cdt)
    w1_p = jnp.pad(w1, ((0, 0), (0, hid_p - hidden))).astype(cdt)
    w2_p = jnp.pad(w2, ((0, hid_p - hidden), (0, dim_p - dim))).astype(cdt)
    b1_p = jnp.pad(b1, (0, hid_p - hidden)).reshape(1, hid_p).astype(jnp.float32)
    b2_p = jnp.pad(b2, (0, dim_p - dim)).reshape(1, dim_p).astype(jnp.float32)

    vmem_limit = int(vmem_needed(tm) * 1.3) + (2 << 20)
    vmem_limit = min(max(vmem_limit, 16 << 20), int(0.8 * capacity))

    cost = pl.CostEstimate(
        flops=2 * M * dim * hid_p + 2 * M * hid_p * dim_p,
        transcendentals=M * hid_p,
        bytes_accessed=(M * dim * csz + M * dim_p * osz
                        + w1_p.size * csz + w2_p.size * csz
                        + (b1_p.size + b2_p.size) * 4),
    )

    out = pl.pallas_call(
        _ffn_kernel,
        out_shape=jax.ShapeDtypeStruct((M, dim_p), out_dtype),
        grid_spec=pltpu.PrefetchScalarGridSpec(
            num_scalar_prefetch=0,
            grid=grid,
            in_specs=[
                # x rows stream through (default double-buffering).
                pl.BlockSpec((tm, dim), lambda i: (i, 0)),
                # Grid-invariant weights / biases: single-buffered.
                pl.BlockSpec((dim, hid_p), lambda i: (0, 0),
                             pipeline_mode=pl.Buffered(1)),
                pl.BlockSpec((1, hid_p), lambda i: (0, 0),
                             pipeline_mode=pl.Buffered(1)),
                pl.BlockSpec((hid_p, dim_p), lambda i: (0, 0),
                             pipeline_mode=pl.Buffered(1)),
                pl.BlockSpec((1, dim_p), lambda i: (0, 0),
                             pipeline_mode=pl.Buffered(1)),
            ],
            out_specs=pl.BlockSpec((tm, dim_p), lambda i: (i, 0)),
        ),
        compiler_params=pltpu.CompilerParams(
            dimension_semantics=("parallel",),
            vmem_limit_bytes=vmem_limit,
        ),
        cost_estimate=cost,
    )(x2d, w1_p, b1_p, w2_p, b2_p)

    if dim_p != dim:
        out = out[:, :dim]
    return out.reshape(B, N, dim)


def init_params(key, dim, hidden_dim, dtype=jnp.float32):
    """Deterministic init mirroring nn.Linear's uniform(-1/sqrt(fan_in), ...)."""
    k1, k2, k3, k4 = jax.random.split(key, 4)
    bound1 = 1.0 / (dim ** 0.5)
    bound2 = 1.0 / (hidden_dim ** 0.5)
    # PyTorch stores weight as (out, in); we keep (in, out) for x @ W.
    w1 = jax.random.uniform(k1, (dim, hidden_dim), dtype, -bound1, bound1)
    b1 = jax.random.uniform(k2, (hidden_dim,), dtype, -bound1, bound1)
    w2 = jax.random.uniform(k3, (hidden_dim, dim), dtype, -bound2, bound2)
    b2 = jax.random.uniform(k4, (dim,), dtype, -bound2, bound2)
    return w1, b1, w2, b2


if __name__ == "__main__":
    dim, hidden_dim = 32, 64
    B, N = 2, 8  # (batch, tokens) -> M = 16 rows; grid gets >= 2 steps via tm

    key = jax.random.PRNGKey(0)
    kx, kp = jax.random.split(key)
    x = jax.random.normal(kx, (B, N, dim), jnp.float32)
    w1, b1, w2, b2 = init_params(kp, dim, hidden_dim)

    # Reference in plain JAX (same math, f32).
    h_ref = x @ w1 + b1
    h_ref = h_ref * jax.nn.sigmoid(h_ref)
    y_ref = h_ref @ w2 + b2

    # f32 operands: tight check.
    out = jax.block_until_ready(feed_forward(x, w1, b1, w2, b2))
    assert out.shape == (B, N, dim)
    assert jnp.allclose(out, y_ref, atol=1e-5, rtol=1e-5)

    # bf16 matmul operands (MXU fast path, f32 accumulation): loose check.
    out_bf16 = jax.block_until_ready(
        feed_forward(x, w1, b1, w2, b2, compute_dtype=jnp.bfloat16))
    assert out_bf16.shape == (B, N, dim)
    assert jnp.allclose(out_bf16, y_ref, atol=3e-2, rtol=3e-2)

    print("KERNEL_OK")
</pallas_src>

<mosaic_0001>
module attributes {stable_mosaic.version = 11 : i64} {
  func.func @_ffn_kernel(%arg0: i32, %arg1: memref<8x32xf32, #tpu.memory_space<vmem>>, %arg2: memref<32x128xf32, #tpu.memory_space<vmem>>, %arg3: memref<1x128xf32, #tpu.memory_space<vmem>>, %arg4: memref<128x128xf32, #tpu.memory_space<vmem>>, %arg5: memref<1x128xf32, #tpu.memory_space<vmem>>, %arg6: memref<8x128xf32, #tpu.memory_space<vmem>>) attributes {dimension_semantics = [#tpu.dimension_semantics<parallel>], iteration_bounds = array<i64: 2>, scalar_prefetch = 0 : i64, scratch_operands = 0 : i64, tpu.core_type = #tpu.core_type<tc>, window_params = [{transform_indices = @transform_0, window_bounds = array<i64: 8, 32>}, {pipeline_mode = #tpu.pipeline_mode<synchronous>, transform_indices = @transform_1, window_bounds = array<i64: 32, 128>}, {pipeline_mode = #tpu.pipeline_mode<synchronous>, transform_indices = @transform_2, window_bounds = array<i64: 1, 128>}, {pipeline_mode = #tpu.pipeline_mode<synchronous>, transform_indices = @transform_3, window_bounds = array<i64: 128, 128>}, {pipeline_mode = #tpu.pipeline_mode<synchronous>, transform_indices = @transform_4, window_bounds = array<i64: 1, 128>}, {transform_indices = @transform_5, window_bounds = array<i64: 8, 128>}]} {
    %c0 = arith.constant 0 : index
    %c0_0 = arith.constant 0 : index
    %0 = vector.load %arg1[%c0, %c0_0] : memref<8x32xf32, #tpu.memory_space<vmem>>, vector<8x32xf32>
    %c0_1 = arith.constant 0 : index
    %c0_2 = arith.constant 0 : index
    %1 = vector.load %arg2[%c0_1, %c0_2] : memref<32x128xf32, #tpu.memory_space<vmem>>, vector<32x128xf32>
    %cst = arith.constant dense<0.000000e+00> : vector<8x128xf32>
    %2 = tpu.matmul %0, %1, %cst {dimension_numbers = #tpu.dot_dimension_numbers<[1], [0], [0], [1], [0, 0, 1, 1], [], []>} : vector<8x32xf32>, vector<32x128xf32>, vector<8x128xf32> -> vector<8x128xf32>
    %c0_3 = arith.constant 0 : index
    %c0_4 = arith.constant 0 : index
    %3 = vector.load %arg3[%c0_3, %c0_4] : memref<1x128xf32, #tpu.memory_space<vmem>>, vector<1x128xf32>
    %4 = vector.broadcast %3 : vector<1x128xf32> to vector<8x128xf32>
    %5 = arith.addf %2, %4 : vector<8x128xf32>
    %6 = arith.negf %5 : vector<8x128xf32>
    %7 = math.exp %6 : vector<8x128xf32>
    %cst_5 = arith.constant 1.000000e+00 : f32
    %8 = vector.broadcast %cst_5 : f32 to vector<8x128xf32>
    %9 = arith.addf %8, %7 : vector<8x128xf32>
    %10 = arith.divf %8, %9 : vector<8x128xf32>
    %11 = arith.mulf %5, %10 : vector<8x128xf32>
    %c0_6 = arith.constant 0 : index
    %c0_7 = arith.constant 0 : index
    %12 = vector.load %arg4[%c0_6, %c0_7] : memref<128x128xf32, #tpu.memory_space<vmem>>, vector<128x128xf32>
    %cst_8 = arith.constant dense<0.000000e+00> : vector<8x128xf32>
    %13 = tpu.matmul %11, %12, %cst_8 {dimension_numbers = #tpu.dot_dimension_numbers<[1], [0], [0], [1], [0, 0, 1, 1], [], []>} : vector<8x128xf32>, vector<128x128xf32>, vector<8x128xf32> -> vector<8x128xf32>
    %c0_9 = arith.constant 0 : index
    %c0_10 = arith.constant 0 : index
    %14 = vector.load %arg5[%c0_9, %c0_10] : memref<1x128xf32, #tpu.memory_space<vmem>>, vector<1x128xf32>
    %15 = vector.broadcast %14 : vector<1x128xf32> to vector<8x128xf32>
    %16 = arith.addf %13, %15 : vector<8x128xf32>
    %c0_11 = arith.constant 0 : index
    %c0_12 = arith.constant 0 : index
    %17 = vector.load %arg6[%c0_11, %c0_12] : memref<8x128xf32, #tpu.memory_space<vmem>>, vector<8x128xf32>
    tpu.vector_store %arg6[%c0_11, %c0_12], %16 {strides = array<i32>} : memref<8x128xf32, #tpu.memory_space<vmem>>, vector<8x128xf32>,
    return
  }
  func.func @transform_0(%arg0: i32) -> (i32, i32) {
    %c0_i32 = arith.constant 0 : i32
    %c0_i32_0 = arith.constant 0 : i32
    return %arg0, %c0_i32 : i32, i32
  }
  func.func @transform_1(%arg0: i32) -> (i32, i32) {
    %c0_i32 = arith.constant 0 : i32
    %c0_i32_0 = arith.constant 0 : i32
    %c0_i32_1 = arith.constant 0 : i32
    return %c0_i32, %c0_i32_0 : i32, i32
  }
  func.func @transform_2(%arg0: i32) -> (i32, i32) {
    %c0_i32 = arith.constant 0 : i32
    %c0_i32_0 = arith.constant 0 : i32
    %c0_i32_1 = arith.constant 0 : i32
    return %c0_i32, %c0_i32_0 : i32, i32
  }
  func.func @transform_3(%arg0: i32) -> (i32, i32) {
    %c0_i32 = arith.constant 0 : i32
    %c0_i32_0 = arith.constant 0 : i32
    %c0_i32_1 = arith.constant 0 : i32
    return %c0_i32, %c0_i32_0 : i32, i32
  }
  func.func @transform_4(%arg0: i32) -> (i32, i32) {
    %c0_i32 = arith.constant 0 : i32
    %c0_i32_0 = arith.constant 0 : i32
    %c0_i32_1 = arith.constant 0 : i32
    return %c0_i32, %c0_i32_0 : i32, i32
  }
  func.func @transform_5(%arg0: i32) -> (i32, i32) {
    %c0_i32 = arith.constant 0 : i32
    %c0_i32_0 = arith.constant 0 : i32
    return %arg0, %c0_i32 : i32, i32
  }
}

</mosaic_0001>

<bundles_post_ra>
// kernel: feed_forward.1
= control target key start
LH: loop header
LB: loop body
LE: loop exit
PB: predicated region body
PF: predicated region fallthrough
CT: control target
= control target key end

     0   :  { %s627_s18 = smov 0   ;;  %s717_s0 = inlined_call_operand.vmem [shape: f32[16,32], index: 0, kind: input, shape index: {}]   ;;  %s718_s1 = inlined_call_operand.vmem [shape: f32[32,128], index: 1, kind: input, shape index: {}]   ;;  %s719_s2 = inlined_call_operand.vmem [shape: f32[1,128], index: 2, kind: input, shape index: {}]   ;;  %s720_s3 = inlined_call_operand.vmem [shape: f32[128,128], index: 3, kind: input, shape index: {}]   ;;  %s721_s4 = inlined_call_operand.vmem [shape: f32[1,128], index: 4, kind: input, shape index: {}]   ;;  %s722_s5 = inlined_call_operand.vmem [shape: f32[16,128], index: 5, kind: output, shape index: {}]  }
   0x1 LB: > { %s460_s19 = sadd.s32 4294967295, %s592_s18   ;;  %p464_p0 = scmp.ge.s32.totalorder %s592_s18, 1  ;;  %s592_s18 = sphi %s627_s18, %s15_s18  }
   0x2   : > { %p186_p1 = scmp.lt.s32.totalorder %s592_s18, 3 }
   0x4   : > { %p187_p2 = pnand %p464_p0, %p186_p1 }
   0x5   : > { %v221_v0 = vld [vmem:[%s718_s1] sm:$0xff] (!%p187_p2)  ;;  %v222_v1 = vld [vmem:[%s718_s1 + $0x8] sm:$0xff] (!%p187_p2)  ;;  %v223_v2 = vld [vmem:[%s718_s1 + $0x10] sm:$0xff] (!%p187_p2)  ;;  %v594_v3 = vmov (!%p187_p2), 0.0|0.0   ;;  %vm595_vm0 = vmmov (!%p187_p2), 0   ;;  %v596_v6 = vmov (!%p187_p2), 0.0  }
   0x6   : > { %190 = sbr.rel (%p187_p2) target bundleno = 474 (0x1da), region = 40  ;;  %541 = vmatprep.subr.bf16.mxu0 (!%p187_p2), %v594_v3  ;;  %v542_v4 = vpack.c.bf16 (!%p187_p2), %v222_v1, %v221_v0  ;;  %v224_v5 = vld [vmem:[%s718_s1 + $0x18] sm:$0xff] (!%p187_p2)  ;;  %503 = vmatprep.mubr.msk.f32.mxu0 (!%p187_p2), %vm595_vm0, %v596_v6  ;;  %p212_p3 = scmp.lt.s32.totalorder (!%p187_p2), %s460_s19, 1  ;;  %vm232_vm1 = vcmask (!%p187_p2), 261120   ;;  %v313_v9 = vld [vmem:[%s720_s3] sm:$0xff] (!%p187_p2)  ;;  %v314_v10 = vld [vmem:[%s720_s3 + $0x8] sm:$0xff] (!%p187_p2) }
   0x7   : > { %547 = vmatprep.subr.bf16.mxu1 (!%p187_p2), %v594_v3  ;;  %538 = vmatprep.mubr.msk.f32.mxu1 (!%p187_p2), %vm595_vm0, %v596_v6  ;;  %v545_v7 = vpack.c.bf16 (!%p187_p2), %v224_v5, %v223_v2  ;;  %v548_v11 = vpack.c.bf16 (!%p187_p2), %v314_v10, %v313_v9  ;;  %v315_v12 = vld [vmem:[%s720_s3 + $0x10] sm:$0xff] (!%p187_p2)  ;;  %v316_v13 = vld [vmem:[%s720_s3 + $0x18] sm:$0xff] (!%p187_p2)  ;;  %v317_v15 = vld [vmem:[%s720_s3 + $0x20] sm:$0xff] (!%p187_p2) }
   0x8   : > { %543 = vmatpush3.bf16.msra.mxu0 (!%p187_p2), %v542_v4  ;;  %v551_v14 = vpack.c.bf16 (!%p187_p2), %v316_v13, %v315_v12  ;;  %v318_v16 = vld [vmem:[%s720_s3 + $0x28] sm:$0xff] (!%p187_p2)  ;;  %v319_v18 = vld [vmem:[%s720_s3 + $0x30] sm:$0xff] (!%p187_p2)  ;;  %v320_v19 = vld [vmem:[%s720_s3 + $0x38] sm:$0xff] (!%p187_p2) }
   0x9   : > { %544 = vmatprep.subr.bf16.mxu0 (!%p187_p2), %v594_v3  ;;  %549 = vmatpush3.bf16.msra.mxu1 (!%p187_p2), %v548_v11  ;;  %v554_v17 = vpack.c.bf16 (!%p187_p2), %v318_v16, %v317_v15  ;;  %v557_v20 = vpack.c.bf16 (!%p187_p2), %v320_v19, %v319_v18  ;;  %v321_v21 = vld [vmem:[%s720_s3 + $0x40] sm:$0xff] (!%p187_p2)  ;;  %v322_v22 = vld [vmem:[%s720_s3 + $0x48] sm:$0xff] (!%p187_p2)  ;;  %v323_v24 = vld [vmem:[%s720_s3 + $0x50] sm:$0xff] (!%p187_p2) }
   0xa   : > { %550 = vmatprep.subr.bf16.mxu1 (!%p187_p2), %v594_v3  ;;  %v560_v23 = vpack.c.bf16 (!%p187_p2), %v322_v22, %v321_v21  ;;  %v324_v25 = vld [vmem:[%s720_s3 + $0x58] sm:$0xff] (!%p187_p2)  ;;  %v325_v27 = vld [vmem:[%s720_s3 + $0x60] sm:$0xff] (!%p187_p2)  ;;  %v326_v28 = vld [vmem:[%s720_s3 + $0x68] sm:$0xff] (!%p187_p2) }
   0xb   : > { %v563_v26 = vpack.c.bf16 (!%p187_p2), %v324_v25, %v323_v24  ;;  %v566_v29 = vpack.c.bf16 (!%p187_p2), %v326_v28, %v325_v27  ;;  %v327_v30 = vld [vmem:[%s720_s3 + $0x70] sm:$0xff] (!%p187_p2)  ;;  %v328_v31 = vld [vmem:[%s720_s3 + $0x78] sm:$0xff] (!%p187_p2)  ;;  %v467_v33 = vld [vmem:[%s719_s2] ss:$0 sm:$0xff] (!%p187_p2) }
   0xc   : > { %546 = vmatpush3.bf16.msra.mxu0 (!%p187_p2), %v545_v7  ;;  %v569_v32 = vpack.c.bf16 (!%p187_p2), %v328_v31, %v327_v30  ;;  %v470_v42 = vld [vmem:[%s721_s4] ss:$0 sm:$0xff] (!%p187_p2) }
   0xd   : > { %s724_s19 = smov (!%p212_p3, %s460_s19), 1  ;;  %552 = vmatpush3.bf16.msra.mxu1 %v551_v14 }
   0xe   : > { %s465_s28 = sshll.u32 %s724_s19, 3  ;;  %553 = vmatprep.subr.bf16.mxu1 %v594_v3 }
   0xf   : > { %s215_s6 = scalar_lea.vmem %s717_s0, %s465_s28  ;;  %s219_s25 = scalar_lea.vmem %s722_s5, %s465_s28 }
  0x10   : > { %v220_v8 = vld [vmem:[%s215_s6] sm:$0xff] }
  0x11   : > { %504 = vmatmul.mubr.msk.f32.vlgmr.msra.gmra.mrb[0].mxu0 %vm232_vm1, %v220_v8  ;;  %555 = vmatpush3.bf16.msra.mxu1 %v554_v17 }
  0x12   : > { %556 = vmatprep.subr.bf16.mxu1 %v594_v3 }
  0x15   : > { %558 = vmatpush3.bf16.msra.mxu1 %v557_v20 }
  0x16   : > { %559 = vmatprep.subr.bf16.mxu1 %v594_v3 }
  0x19   : > { %561 = vmatpush3.bf16.msra.mxu1 %v560_v23 }
  0x1a   : > { %562 = vmatprep.subr.bf16.mxu1 %v594_v3 }
  0x1d   : > { %564 = vmatpush3.bf16.msra.mxu1 %v563_v26 }
  0x1e   : > { %565 = vmatprep.subr.bf16.mxu1 %v594_v3 }
  0x21   : > { %567 = vmatpush3.bf16.msra.mxu1 %v566_v29 }
  0x22   : > { %568 = vmatprep.subr.bf16.mxu1 %v594_v3 }
  0x25   : > { %570 = vmatpush3.bf16.msra.mxu1 %v569_v32 }
  0xe4   : > { %v302_v34 = vpop.f32.mrb[0].mxu0 }
  0xe5   : > { %v303_v35 = vadd.f32 %v467_v33, %v302_v34  ;;  %v505_v36 = vpop.f32.mrb[1].mxu0 }
  0xe7   : > { %v469_v37 = vmul.f32 -1.442695, %v303_v35 }
  0xe9   : > { %582 = vpow2.f32 %v469_v37 }
  0xf3   : > { %v583_v38 = vpop.eup %582 }
  0xf4   : > { %v309_v39 = vadd.f32 1.0, %v583_v38 }
  0xf6   : > { %584 = vrcp.f32 %v309_v39 }
 0x100   : > { %v585_v40 = vpop.eup %584 }
 0x101   : > { %v312_v41 = vmul.f32 %v585_v40, %v303_v35 }
 0x103   : > { %539 = vmatmul.mubr.f32.vlgmr.msra.gmra.mrb[0].mxu1 %v312_v41 }
 0x1d6   : > { %v402_v43 = vpop.f32.mrb[0].mxu1 }
 0x1d7   : > { %v403_v44 = vadd.f32 %v470_v42, %v402_v43  ;;  %v540_v45 = vpop.f32.mrb[1].mxu1 }
 0x1d9   : > { %406 = vst [vmem:[%s219_s25] sm:$0xff] %v403_v44 }
 0x1da PF: > { %s15_s18 = sadd.s32 1, %s592_s18  }
 0x1db   : > { %p12_p4 = scmp.ge.s32.totalorder %s15_s18, 4  }
 0x1dd   :  { %14 = sbr.rel (!%p12_p4) target bundleno = 1 (0x1), region = 70 }

</bundles_post_ra>
